<compile_context>
chip_gen: v5e
topology: v5e:2x2
jax: 0.10.0
libtpu: 0.0.40
codegen_flags: <defaults>
</compile_context>

<pallas_src>
import jax
import jax.numpy as jnp
from jax.experimental import pallas as pl
from jax.experimental.pallas import tpu as pltpu

_SUBLANE = 8
_LANE = 128
_HALO_ROWS = 8                  # sublane-aligned row halo; supports kh - 1 <= 8
_TARGET_STRIPES = 8             # keep v7x's 2 TCs + the DMA pipeline busy
_MIN_STRIPE_BYTES = 256 * 1024  # amortize the ~0.35us per-grid-step overhead
_MAX_TILE_HO = 2048


def _round_up(a: int, b: int) -> int:
    return (a + b - 1) // b * b


def _corr_taps(w_ref, bias, slab, out_rows, out_cols):
    """out[r, c] = sum_{di,dj} slab[r+di, c+dj] * w[di, dj] + bias, in f32.

    All kh*kw taps are static windows of the single `slab` value (loaded once
    from VMEM); no stripe-sized concatenate / scratch copies are built.  Bias
    is folded into the accumulator init (one fewer full-tile VALU pass).
    Requires slab.shape >= (out_rows + kh - 1, out_cols + kw - 1).
    """
    kh, kw = w_ref.shape                        # static python ints at trace time
    acc = jnp.full((out_rows, out_cols), bias, dtype=jnp.float32)
    for di in range(kh):                        # tiny static footprint -> unrolled
        for dj in range(kw):
            acc = acc + slab[di:di + out_rows, dj:dj + out_cols] * w_ref[di, dj]
    return acc


def _corr2d_single_kernel(w_ref, b_ref, x_ref, o_ref):
    """Whole image in one block (small inputs): no halo, no partial blocks."""
    ho, wo = o_ref.shape
    x = x_ref[...].astype(jnp.float32)          # one aligned load of the image
    o_ref[...] = _corr_taps(w_ref, b_ref[0], x, ho, wo).astype(o_ref.dtype)


def _corr2d_striped_kernel(w_ref, b_ref, xm_ref, xh_ref, o_ref):
    """One output row-stripe.

    xm_ref is the (tile_ho, W) input stripe, xh_ref the next 8 input rows
    (row halo), both VMEM.  Rows [0, tile_ho - 8) only need main-stripe taps
    (kh - 1 <= 8); the bottom 8 rows are recomputed from a tiny (16, W) slab
    (last 8 stripe rows + halo), so no stripe-sized copy is materialized and
    every store stays sublane-aligned.
    """
    tile_h, wo = o_ref.shape                    # static python ints
    bias = b_ref[0]
    xm = xm_ref[...].astype(jnp.float32)        # one aligned stripe load

    if tile_h > _SUBLANE:                       # trace-time branch
        acc_top = _corr_taps(w_ref, bias, xm, tile_h - _SUBLANE, wo)
        o_ref[: tile_h - _SUBLANE, :] = acc_top.astype(o_ref.dtype)

    bot = jnp.concatenate(                      # tiny (16, W) slab, not stripe-sized
        [xm[tile_h - _SUBLANE:, :], xh_ref[...].astype(jnp.float32)], axis=0)
    acc_bot = _corr_taps(w_ref, bias, bot, _SUBLANE, wo)
    o_ref[tile_h - _SUBLANE:, :] = acc_bot.astype(o_ref.dtype)


def conv2d_forward(x, weight, bias, *, tile_ho=None):
    """Equivalent of Conv2D.forward: corr2d(x, weight) + bias (x is 2-D)."""
    H, W = x.shape
    kh, kw = weight.shape
    assert kh - 1 <= _HALO_ROWS, "kernel height > 9 not supported by the 8-row halo"
    Ho, Wo = H - kh + 1, W - kw + 1
    assert Ho >= 1 and Wo >= 1, "kernel larger than input"

    weight = weight.astype(jnp.float32)
    bias = bias.astype(jnp.float32).reshape((1,))
    out_dtype = x.dtype
    in_bytes = jnp.dtype(x.dtype).itemsize
    out_bytes = jnp.dtype(out_dtype).itemsize

    # --- generation-aware VMEM budget ---------------------------------------
    try:
        vmem_cap = int(pltpu.get_tpu_info().vmem_capacity_bytes)
    except Exception:
        vmem_cap = 64 * 1024 * 1024             # conservative (v7x-sized) fallback
    budget = vmem_cap // 3                      # stripe buffers + kernel temporaries

    lanes_w = _round_up(W, _LANE)               # physical lane footprint per row
    lanes_wo = _round_up(Wo, _LANE)
    # Per output row: double-buffered input + output pipeline blocks plus ~4
    # stripe-sized f32 temporaries (loaded slab, accumulator, tap windows).
    per_row = 2 * lanes_w * in_bytes + 2 * lanes_wo * out_bytes + 4 * lanes_w * 4

    if tile_ho is None:
        by_vmem = max(_SUBLANE, (budget // per_row) // _SUBLANE * _SUBLANE)
        by_split = _round_up(pl.cdiv(Ho, _TARGET_STRIPES), _SUBLANE)
        min_rows = _round_up(pl.cdiv(_MIN_STRIPE_BYTES, lanes_w * in_bytes), _SUBLANE)
        tile_ho = min(by_vmem, max(by_split, min_rows), _MAX_TILE_HO)
    tile_ho = max(int(tile_ho), _SUBLANE)
    tile_ho = min(_round_up(tile_ho, _SUBLANE), _round_up(Ho, _SUBLANE))

    cost = pl.CostEstimate(
        flops=2 * kh * kw * Ho * Wo,
        transcendentals=0,
        bytes_accessed=H * W * in_bytes + Ho * Wo * out_bytes + (kh * kw + 1) * 4)
    cparams = pltpu.CompilerParams(
        dimension_semantics=("parallel",),      # shard stripes across TCs on v7x
        vmem_limit_bytes=int(min(vmem_cap * 3 // 4, 112 * 1024 * 1024)))
    smem = pltpu.MemorySpace.SMEM

    if tile_ho >= Ho:
        # Whole output fits one stripe: full-extent blocks, no halo, no partial
        # blocks.  Also covers images smaller than (8, 128).
        return pl.pallas_call(
            _corr2d_single_kernel,
            grid=(1,),
            out_shape=jax.ShapeDtypeStruct((Ho, Wo), out_dtype),
            in_specs=[
                pl.BlockSpec(memory_space=smem),             # weight (kh, kw)
                pl.BlockSpec(memory_space=smem),             # bias (1,)
                pl.BlockSpec((H, W), lambda i: (0, 0)),      # whole image
            ],
            out_specs=pl.BlockSpec((Ho, Wo), lambda i: (0, 0)),
            compiler_params=cparams,
            cost_estimate=cost,
        )(weight, bias, x)

    n_stripes = pl.cdiv(Ho, tile_ho)
    halo_blk = tile_ho // _SUBLANE              # halo row-block stride
    max_halo_blk = (H - 1) // _SUBLANE          # clamp: last stripe's halo stays in-bounds
    # (when the clamp engages, the halo only feeds output rows >= Ho, which the
    #  partial last output block drops anyway)

    return pl.pallas_call(
        _corr2d_striped_kernel,
        grid=(n_stripes,),
        out_shape=jax.ShapeDtypeStruct((Ho, Wo), out_dtype),
        in_specs=[
            pl.BlockSpec(memory_space=smem),                 # weight (kh, kw)
            pl.BlockSpec(memory_space=smem),                 # bias (1,)
            pl.BlockSpec((tile_ho, W), lambda i: (i, 0)),    # main stripe
            pl.BlockSpec((_HALO_ROWS, W),                    # 8-row halo, clamped
                         lambda i: (jnp.minimum((i + 1) * halo_blk, max_halo_blk), 0)),
        ],
        out_specs=pl.BlockSpec((tile_ho, Wo), lambda i: (i, 0)),
        compiler_params=cparams,
        cost_estimate=cost,
    )(weight, bias, x, x)


if __name__ == "__main__":
    root = jax.random.PRNGKey(0)
    k1, k2, k3, k4, k5, k6 = jax.random.split(root, 6)

    def ref_corr2d(x, w, b):
        xf = x.astype(jnp.float32)
        wf = w.astype(jnp.float32)
        kh, kw = wf.shape
        Ho, Wo = xf.shape[0] - kh + 1, xf.shape[1] - kw + 1
        r = jnp.zeros((Ho, Wo), jnp.float32)
        for di in range(kh):
            for dj in range(kw):
                r = r + xf[di:di + Ho, dj:dj + Wo] * wf[di, dj]
        return r + b.astype(jnp.float32)[0]

    # Case 1: the d2l shapes - 6x8 image, (1, 2) kernel, zero bias (single-block path).
    x1 = jax.random.normal(k1, (6, 8), dtype=jnp.float32)
    w1 = jax.random.uniform(k2, (1, 2), dtype=jnp.float32)   # torch.rand(kernel_size)
    b1 = jnp.zeros((1,), dtype=jnp.float32)                  # torch.zeros(1)
    out1 = jax.block_until_ready(conv2d_forward(x1, w1, b1))
    ref1 = ref_corr2d(x1, w1, b1)
    assert out1.shape == ref1.shape and out1.dtype == x1.dtype
    assert jnp.allclose(out1, ref1, atol=1e-5, rtol=1e-5), "case 1 mismatch"

    # Case 2: multi-stripe grid, row halo, clamped halo + partial last blocks.
    x2 = jax.random.normal(k3, (40, 24), dtype=jnp.float32)
    w2 = jax.random.uniform(k4, (3, 3), dtype=jnp.float32)
    b2 = jnp.full((1,), 0.25, dtype=jnp.float32)
    out2 = jax.block_until_ready(conv2d_forward(x2, w2, b2, tile_ho=16))
    ref2 = ref_corr2d(x2, w2, b2)
    assert out2.shape == ref2.shape
    assert jnp.allclose(out2, ref2, atol=1e-5, rtol=1e-5), "case 2 mismatch"

    # Case 3: wider image (multi-vreg row), taller (4, 5) kernel, striped path.
    x3 = jax.random.normal(k5, (50, 200), dtype=jnp.float32)
    w3 = jax.random.uniform(k6, (4, 5), dtype=jnp.float32)
    b3 = jnp.full((1,), -0.5, dtype=jnp.float32)
    out3 = jax.block_until_ready(conv2d_forward(x3, w3, b3, tile_ho=8))
    ref3 = ref_corr2d(x3, w3, b3)
    assert out3.shape == ref3.shape
    assert jnp.allclose(out3, ref3, atol=1e-4, rtol=1e-4), "case 3 mismatch"

    # Case 4: bf16 input -> bf16 output (f32 accumulation inside the kernel).
    x4 = x2.astype(jnp.bfloat16)
    out4 = jax.block_until_ready(conv2d_forward(x4, w2, b2, tile_ho=16))
    ref4 = ref_corr2d(x4, w2, b2)
    assert out4.dtype == jnp.bfloat16 and out4.shape == ref4.shape
    assert jnp.allclose(out4.astype(jnp.float32), ref4, atol=5e-2, rtol=5e-2), "case 4 mismatch"

    print("KERNEL_OK")
</pallas_src>

<mosaic_0001>
module attributes {stable_mosaic.version = 11 : i64} {
  func.func @_corr2d_single_kernel(%arg0: i32, %arg1: memref<1x2xf32, #tpu.memory_space<smem>>, %arg2: memref<1xf32, #tpu.memory_space<smem>>, %arg3: memref<6x8xf32, #tpu.memory_space<vmem>>, %arg4: memref<6x7xf32, #tpu.memory_space<vmem>>) attributes {dimension_semantics = [#tpu.dimension_semantics<parallel>], iteration_bounds = array<i64: 1>, scalar_prefetch = 0 : i64, scratch_operands = 0 : i64, tpu.core_type = #tpu.core_type<tc>, window_params = [{transform_indices = @transform_0, window_bounds = array<i64: 1, 2>}, {transform_indices = @transform_1, window_bounds = array<i64: 1>}, {pipeline_mode = #tpu.pipeline_mode<synchronous>, transform_indices = @transform_2, window_bounds = array<i64: 6, 8>}, {pipeline_mode = #tpu.pipeline_mode<synchronous>, transform_indices = @transform_3, window_bounds = array<i64: 6, 7>}]} {
    %c0 = arith.constant 0 : index
    %c0_0 = arith.constant 0 : index
    %0 = vector.load %arg3[%c0, %c0_0] : memref<6x8xf32, #tpu.memory_space<vmem>>, vector<6x8xf32>
    %c0_1 = arith.constant 0 : index
    %1 = memref.load %arg2[%c0_1] : memref<1xf32, #tpu.memory_space<smem>>
    %2 = vector.broadcast %1 : f32 to vector<6x7xf32>
    %3 = vector.extract_strided_slice %0 {offsets = [0, 0], sizes = [6, 7], strides = [1, 1]} : vector<6x8xf32> to vector<6x7xf32>
    %c0_2 = arith.constant 0 : index
    %c0_3 = arith.constant 0 : index
    %4 = memref.load %arg1[%c0_2, %c0_3] : memref<1x2xf32, #tpu.memory_space<smem>>
    %5 = vector.broadcast %4 : f32 to vector<6x7xf32>
    %6 = arith.mulf %3, %5 : vector<6x7xf32>
    %7 = arith.addf %2, %6 : vector<6x7xf32>
    %8 = vector.extract_strided_slice %0 {offsets = [0, 1], sizes = [6, 7], strides = [1, 1]} : vector<6x8xf32> to vector<6x7xf32>
    %c0_4 = arith.constant 0 : index
    %c1 = arith.constant 1 : index
    %9 = memref.load %arg1[%c0_4, %c1] : memref<1x2xf32, #tpu.memory_space<smem>>
    %10 = vector.broadcast %9 : f32 to vector<6x7xf32>
    %11 = arith.mulf %8, %10 : vector<6x7xf32>
    %12 = arith.addf %7, %11 : vector<6x7xf32>
    %c0_5 = arith.constant 0 : index
    %c0_6 = arith.constant 0 : index
    %13 = vector.load %arg4[%c0_5, %c0_6] : memref<6x7xf32, #tpu.memory_space<vmem>>, vector<6x7xf32>
    tpu.vector_store %arg4[%c0_5, %c0_6], %12 {strides = array<i32>} : memref<6x7xf32, #tpu.memory_space<vmem>>, vector<6x7xf32>,
    return
  }
  func.func @transform_0(%arg0: i32) -> (i32, i32) {
    %c0_i32 = arith.constant 0 : i32
    %c0_i32_0 = arith.constant 0 : i32
    %c0_i32_1 = arith.constant 0 : i32
    return %c0_i32, %c0_i32_0 : i32, i32
  }
  func.func @transform_1(%arg0: i32) -> i32 {
    %c0_i32 = arith.constant 0 : i32
    %c0_i32_0 = arith.constant 0 : i32
    return %c0_i32 : i32
  }
  func.func @transform_2(%arg0: i32) -> (i32, i32) {
    %c0_i32 = arith.constant 0 : i32
    %c0_i32_0 = arith.constant 0 : i32
    %c0_i32_1 = arith.constant 0 : i32
    return %c0_i32, %c0_i32_0 : i32, i32
  }
  func.func @transform_3(%arg0: i32) -> (i32, i32) {
    %c0_i32 = arith.constant 0 : i32
    %c0_i32_0 = arith.constant 0 : i32
    %c0_i32_1 = arith.constant 0 : i32
    return %c0_i32, %c0_i32_0 : i32, i32
  }
}

</mosaic_0001>

<bundles_post_ra>
// kernel: tpu_custom_call.1
= control target key start
LH: loop header
LB: loop body
LE: loop exit
PB: predicated region body
PF: predicated region fallthrough
CT: control target
= control target key end

     0   :  { %9 = vsyncpa [#allocation6], 0  ;;  %s185_s0 = inlined_call_operand.vmem [shape: f32[1,2], index: 0, kind: input, shape index: {}]   ;;  %s186_s1 = inlined_call_operand.<no memory space> [shape: f32[1], index: 1, kind: input, shape index: {}]   ;;  %s187_s2 = inlined_call_operand.hbm [shape: f32[6,8], index: 2, kind: input, shape index: {}]   ;;  %s188_s3 = inlined_call_operand.hbm [shape: f32[6,7], index: 3, kind: output, shape index: {}]  }
   0x1   :  { %10 = vsyncpa [#allocation4], 0 }
   0x2   :  { %11 = vsyncpa [#allocation5], 0  ;;  %s17_s14 = sshll.u32 %s185_s0, 4  ;;  %s28_s17 = sshll.u32 %s187_s2, 4  ;;  %s18_s14 = int_to_ptr.vmem [resolvable:$true] %s17_s14  ;;  %s29_s17 = int_to_ptr.hbm [resolvable:$true] %s28_s17 }
   0x3   :  { %s149_s18 = smov [#allocation3]   ;;  %s150_s19 = smov [#allocation7]  }
   0x4   :  { %20 = dma.vmem_to_smem %s18_s14, 16, %s149_s18, [#allocation6]  }
   0x5   :  { %s30_s20 = sshll.u32 %s150_s19, 4  ;;  %s31_s20 = int_to_ptr.vmem [resolvable:$true] %s30_s20 }
   0x6   :  { %33 = dma.hbm_to_vmem [thread:$0]  %s29_s17, 128, %s31_s20, [#allocation4]  }
   0x7   :  { %143 = dma.done.wait [#allocation6], 16  }
   0x8   :  { %144 = vsyncadd [#allocation6], 4294967280 }
   0x9   :  { %145 = dma.done.wait [#allocation4], 128  }
   0xa   :  { %146 = vsyncadd [#allocation4], 4294967168 }
   0xb   :  { %42 = sfence }
   0xc   :  { %s78_s21 = sld [smem:[#allocation3 + $0x1]]  ;;  %v43_v0 = vld [vmem:[#allocation7] sm:$0x3f]  ;;  %s151_s0 = smov 127   ;;  %v45_v5 = vstv %s186_s1  ;;  %vm58_vm0 = vcmask 54272  }
   0xd   :  { %s46_s22 = sld [smem:[#allocation3]]  ;;  %s152_s24 = smov [#allocation8]  }
   0xe   :  { %s65_s25 = sshll.u32 %s152_s24, 4  ;;  %s67_s28 = sshll.u32 %s188_s3, 4  ;;  %s66_s25 = int_to_ptr.vmem [resolvable:$true] %s65_s25  ;;  %s68_s28 = int_to_ptr.hbm [resolvable:$true] %s67_s28 }
  0x12   :  { %v51_v1 = vstv %s78_s21 }
  0x13   :  { %v52_v2 = vmul.f32 %v51_v1, %v43_v0  ;;  %v47_v3 = vstv %s46_s22 }
  0x14   :  { %v48_v4 = vmul.f32 %v47_v3, %v43_v0 }
  0x15   :  { %54 = vrot.lane.b32.xlu0 %v52_v2, %s151_s0 }
  0x16   :  { %v49_v6 = vadd.f32 %v48_v4, %v45_v5 }
  0x87   :  { %v55_v7 = vpop.permute.xlu0 %54 }
  0x88   :  { %v57_v8 = vadd.f32 %v55_v7, %v49_v6 }
  0x8a   :  { %59 = vst.msk [vmem:[#allocation8] sm:$0x3f] %vm58_vm0, %v57_v8 }
  0x8b   :  { %70 = dma.vmem_to_hbm [thread:$0]  %s66_s25, 128, %s68_s28, [#allocation5]  }
  0x8c   :  { %147 = dma.done.wait [#allocation5], 128  }
  0x8d   :  { %148 = vsyncadd [#allocation5], 4294967168 }
  0x8e   :  { %75 = vsyncpa [#allocation4], 1 }
  0x8f   :  { %76 = vsyncpa [#allocation5], 1 }
  0x90   :  { %77 = vsyncpa [#allocation6], 1 }

</bundles_post_ra>
